<compile_context>
chip_gen: v7x
topology: tpu7x:2x2x1
jax: 0.10.0
libtpu: 0.0.40
codegen_flags: <defaults>
</compile_context>

<pallas_src>
import math
from functools import partial

import jax
import jax.numpy as jnp
from jax.experimental import pallas as pl
from jax.experimental.pallas import tpu as pltpu

LOG_2PI = math.log(2.0 * math.pi)


# -----------------------------------------------------------------------------
# Fused kernel: grid = (B // TB,), one block = TB images packed as (TB*C, HW).
#
#   x   = preprocess(data, n_bits)
#   xp  = global avg pool;  mu,lv = xp @ W + b;  z_s = mu + std*eps_z;  KL
#   mu_u = 1x1-conv(x)  (block-diag matmul, sample independent)
#   per sample s:
#     v = mu_u + eps_u;  u = sigmoid(v)
#     log q(u|x) = sum[ logN(eps;0,1) + 2*softplus(v) - v ]
#     (s,t) = cond(z_s);  r = (preprocess(data,n_bits,u) - t) * exp(-s)
#     log p(x|z) = sum logN(r;0,1) - HW * sum(s)
#   outputs (per image): loss_gen = -mean_s log p, kl, loss_dequant = mean_s log q
# -----------------------------------------------------------------------------
def _wolf_fused_kernel(d_ref, epsu_ref, epsz_ref,
                       wblk_ref, bdq_ref,
                       wmu_ref, wlv_ref, bmu_ref, blv_ref,
                       ws_ref, wt_ref, bs_ref, bt_ref,
                       seg_ref, exp_ref,
                       lgen_ref, kl_ref, ldq_ref,
                       *, n_bits, nsamples, C):
    n_bins = float(2 ** n_bits)
    scale = 2.0 / n_bins

    d = d_ref[...]                              # (TB*C, HW) raw data in [0,1]
    TBC, HW = d.shape
    tb = TBC // C

    # ---- preprocess(data, n_bits) (fused, never materialized in HBM) -------
    d255 = d * 255.0
    if n_bits < 8:
        d255 = jnp.floor(d255 / float(2 ** (8 - n_bits)))
    x = d255 * scale - 1.0                      # (TB*C, HW)

    # ---- Discriminator.sampling_and_KL --------------------------------------
    xp = jnp.mean(x, axis=1, keepdims=True)     # (TB*C, 1) global avg pool
    mu_z = jnp.dot(seg_ref[...], xp * wmu_ref[...],
                   preferred_element_type=jnp.float32) + bmu_ref[...]  # (TB, Z)
    lv_z = jnp.dot(seg_ref[...], xp * wlv_ref[...],
                   preferred_element_type=jnp.float32) + blv_ref[...]  # (TB, Z)
    std_z = jnp.exp(0.5 * lv_z)
    var_z = std_z * std_z
    kl = 0.5 * jnp.sum(var_z + mu_z * mu_z - 1.0 - lv_z, axis=1)       # (TB,)
    kl_ref[0, :] = kl

    # ---- DeQuantizer conditional mean (sample independent, computed once) --
    # 1x1-conv channel mix = one block-diagonal matmul: kron(I_TB, W^T) @ x.
    mu_u = jnp.dot(wblk_ref[...], x,
                   preferred_element_type=jnp.float32) + bdq_ref[...]  # (TB*C, HW)

    c_const = 0.5 * LOG_2PI * float(C * HW)
    logq_acc = jnp.zeros((tb, 1), jnp.float32)
    logp_acc = jnp.zeros((tb, 1), jnp.float32)

    for s in range(nsamples):                   # static unroll over samples
        eps = epsu_ref[s]                       # (TB*C, HW) ~ N(0,1)
        v = mu_u + eps
        # one shared exp feeds both sigmoid and softplus
        e = jnp.exp(-jnp.abs(v))
        u = jnp.where(v >= 0.0, 1.0, e) / (1.0 + e)        # sigmoid(v)
        sp = jnp.maximum(v, 0.0) + jnp.log1p(e)            # softplus(v)

        # log q(u|x):  logN(eps;0,1) + exact Jacobian -log(u(1-u)) = 2*sp - v
        q_elem = 2.0 * sp - v - 0.5 * eps * eps
        q_rows = jnp.sum(q_elem, axis=1, keepdims=True)    # (TB*C, 1)
        logq = jnp.dot(seg_ref[...], q_rows,
                       preferred_element_type=jnp.float32) - c_const   # (TB, 1)
        logq_acc = logq_acc + logq

        # ---- Generator.log_probability on preprocess(data, n_bits, u) ------
        xn = x + u * scale                                  # reuse preprocessed x
        z_s = mu_z + std_z * epsz_ref[:, s, :]              # (TB, Z) posterior sample
        z_pk = jnp.dot(exp_ref[...], z_s,
                       preferred_element_type=jnp.float32)  # (TB*C, Z) packed rows
        s_col = jnp.tanh(jnp.sum(z_pk * ws_ref[...], axis=1, keepdims=True)
                         + bs_ref[...])                     # (TB*C, 1) per-channel s
        t_col = (jnp.sum(z_pk * wt_ref[...], axis=1, keepdims=True)
                 + bt_ref[...])                             # (TB*C, 1) per-channel t
        a_col = jnp.exp(-s_col)
        r = (xn - t_col) * a_col
        rr_rows = jnp.sum(r * r, axis=1, keepdims=True)     # (TB*C, 1)
        rr_img = jnp.dot(seg_ref[...], rr_rows, preferred_element_type=jnp.float32)
        sdet = jnp.dot(seg_ref[...], s_col, preferred_element_type=jnp.float32)
        logp = -0.5 * rr_img - c_const - float(HW) * sdet   # (TB, 1)
        logp_acc = logp_acc + logp

    inv_ns = 1.0 / float(nsamples)
    ldq_ref[0, :] = (logq_acc * inv_ns)[:, 0]               # loss_dequant
    lgen_ref[0, :] = (logp_acc * (-inv_ns))[:, 0]           # loss_gen = -mean logp


# -----------------------------------------------------------------------------
# Parameter init (deterministic, synthetic)
# -----------------------------------------------------------------------------
def init_params(key, C, Z):
    ks = jax.random.split(key, 6)
    scale = 0.1
    return dict(
        w_dq=scale * jax.random.normal(ks[0], (C, C), jnp.float32),
        b_dq=jnp.zeros((1, C), jnp.float32),
        w_mu=scale * jax.random.normal(ks[1], (C, Z), jnp.float32),
        b_mu=jnp.zeros((1, Z), jnp.float32),
        w_lv=scale * jax.random.normal(ks[2], (C, Z), jnp.float32),
        b_lv=-1.0 * jnp.ones((1, Z), jnp.float32),
        w_s=scale * jax.random.normal(ks[3], (Z, C), jnp.float32),
        b_s=jnp.zeros((1, C), jnp.float32),
        w_t=scale * jax.random.normal(ks[4], (Z, C), jnp.float32),
        b_t=jnp.zeros((1, C), jnp.float32),
    )


# -----------------------------------------------------------------------------
# WolfCore.forward
# -----------------------------------------------------------------------------
def wolf_core_forward(data_nchw, params, noise_key, nsamples=1, n_bits=8,
                      batch_tile=None):
    B, C, H, W = data_nchw.shape
    HW = H * W
    Z = params["w_mu"].shape[1]

    # Batch tile: fill the 8 sublanes of a vreg tile (TB*C >= 8 when possible)
    # and amortize the ~0.35 us/grid-step overhead.  For larger B keep
    # B // TB >= 2 blocks so both v7x TensorCores get work; re-derive TB
    # against the VMEM budget (v7x 64 MiB / v5e 16 MiB scoped default).
    if batch_tile is None:
        batch_tile = max(1, min(B, -(-8 // C)))   # ceil(8/C) images
        while B % batch_tile != 0:
            batch_tile -= 1
    tb = batch_tile
    nb = B // tb
    TBC = tb * C

    # Lane-dense packed layout: NCHW -> (B*C, HW).  Pure reshape; channels of
    # TB consecutive images stack on the sublane axis of each block.
    data = data_nchw.reshape(B * C, HW)

    # TODO(synk): on real TPU, generate both noises in-kernel with
    # pltpu.prng_seed + pltpu.stateful_normal (scalar-prefetched seed) to drop
    # this DMA; kept as explicit f32 inputs for interpret-mode portability.
    k_u, k_z = jax.random.split(noise_key)
    eps_u = jax.random.normal(k_u, (nsamples, B * C, HW), jnp.float32)
    eps_z = jax.random.normal(k_z, (B, nsamples, Z), jnp.float32)

    # Tiny precomputed parameter tiles in the packed (TB*C, ...) row layout so
    # the kernel never reshapes between per-image and per-row views.
    f32 = jnp.float32
    eye_tb = jnp.eye(tb, dtype=f32)
    wblk = jnp.kron(eye_tb, params["w_dq"].T)                        # (TBC, TBC)
    bdq = jnp.tile(params["b_dq"].reshape(C, 1), (tb, 1))            # (TBC, 1)
    wmu = jnp.tile(params["w_mu"], (tb, 1))                          # (TBC, Z)
    wlv = jnp.tile(params["w_lv"], (tb, 1))                          # (TBC, Z)
    ws = jnp.tile(params["w_s"].T, (tb, 1))                          # (TBC, Z)
    wt = jnp.tile(params["w_t"].T, (tb, 1))                          # (TBC, Z)
    bs = jnp.tile(params["b_s"].reshape(C, 1), (tb, 1))              # (TBC, 1)
    bt = jnp.tile(params["b_t"].reshape(C, 1), (tb, 1))              # (TBC, 1)
    seg = jnp.kron(eye_tb, jnp.ones((1, C), f32))                    # (TB, TBC) per-image sum
    expand = jnp.kron(eye_tb, jnp.ones((C, 1), f32))                 # (TBC, TB) per-image bcast
    bmu = params["b_mu"]                                             # (1, Z)
    blv = params["b_lv"]                                             # (1, Z)

    def full2(shape):
        return pl.BlockSpec(shape, lambda i: (0, 0))

    loss_gen, kl, loss_dequant = pl.pallas_call(
        partial(_wolf_fused_kernel, n_bits=n_bits, nsamples=nsamples, C=C),
        grid=(nb,),
        in_specs=[
            pl.BlockSpec((TBC, HW), lambda i: (i, 0)),               # data
            pl.BlockSpec((nsamples, TBC, HW), lambda i: (0, i, 0)),  # eps_u
            pl.BlockSpec((tb, nsamples, Z), lambda i: (i, 0, 0)),    # eps_z
            full2((TBC, TBC)),                                       # wblk
            full2((TBC, 1)),                                         # bdq
            full2((TBC, Z)),                                         # wmu
            full2((TBC, Z)),                                         # wlv
            full2((1, Z)),                                           # bmu
            full2((1, Z)),                                           # blv
            full2((TBC, Z)),                                         # ws
            full2((TBC, Z)),                                         # wt
            full2((TBC, 1)),                                         # bs
            full2((TBC, 1)),                                         # bt
            full2((tb, TBC)),                                        # seg
            full2((TBC, tb)),                                        # expand
        ],
        out_specs=[
            pl.BlockSpec((1, tb), lambda i: (i, 0)),                 # loss_gen row
            pl.BlockSpec((1, tb), lambda i: (i, 0)),                 # kl row
            pl.BlockSpec((1, tb), lambda i: (i, 0)),                 # loss_dequant row
        ],
        out_shape=[
            jax.ShapeDtypeStruct((nb, tb), jnp.float32),
            jax.ShapeDtypeStruct((nb, tb), jnp.float32),
            jax.ShapeDtypeStruct((nb, tb), jnp.float32),
        ],
        compiler_params=pltpu.CompilerParams(
            dimension_semantics=("parallel",)),
    )(data, eps_u, eps_z, wblk, bdq, wmu, wlv, bmu, blv, ws, wt, bs, bt,
      seg, expand)

    return (loss_gen.reshape(B), kl.reshape(B), loss_dequant.reshape(B))


if __name__ == "__main__":
    key = jax.random.PRNGKey(0)
    k_data, k_param, k_noise = jax.random.split(key, 3)

    B, C, H, W = 2, 4, 16, 16          # NCHW like the PyTorch module's input
    Z = 32                             # latent (h) dimension
    nsamples = 2

    data = jax.random.uniform(k_data, (B, C, H, W), jnp.float32)  # images in [0,1]
    params = init_params(k_param, C, Z)

    loss_gen, kl, loss_dequant = wolf_core_forward(
        data, params, k_noise, nsamples=nsamples, n_bits=8)
    jax.block_until_ready((loss_gen, kl, loss_dequant))

    assert loss_gen.shape == (B,)
    assert kl.shape == (B,)
    assert loss_dequant.shape == (B,)
    assert bool(jnp.all(jnp.isfinite(loss_gen)))
    assert bool(jnp.all(jnp.isfinite(kl)))
    assert bool(jnp.all(jnp.isfinite(loss_dequant)))

    print("KERNEL_OK")
</pallas_src>

<mosaic_0001>
module attributes {stable_mosaic.version = 11 : i64} {
  func.func @_wolf_fused_kernel(%arg0: i32, %arg1: memref<8x256xf32, #tpu.memory_space<vmem>>, %arg2: memref<2x8x256xf32, #tpu.memory_space<vmem>>, %arg3: memref<2x2x32xf32, #tpu.memory_space<vmem>>, %arg4: memref<8x8xf32, #tpu.memory_space<vmem>>, %arg5: memref<8x1xf32, #tpu.memory_space<vmem>>, %arg6: memref<8x32xf32, #tpu.memory_space<vmem>>, %arg7: memref<8x32xf32, #tpu.memory_space<vmem>>, %arg8: memref<1x32xf32, #tpu.memory_space<vmem>>, %arg9: memref<1x32xf32, #tpu.memory_space<vmem>>, %arg10: memref<8x32xf32, #tpu.memory_space<vmem>>, %arg11: memref<8x32xf32, #tpu.memory_space<vmem>>, %arg12: memref<8x1xf32, #tpu.memory_space<vmem>>, %arg13: memref<8x1xf32, #tpu.memory_space<vmem>>, %arg14: memref<2x8xf32, #tpu.memory_space<vmem>>, %arg15: memref<8x2xf32, #tpu.memory_space<vmem>>, %arg16: memref<1x2xf32, #tpu.memory_space<vmem>>, %arg17: memref<1x2xf32, #tpu.memory_space<vmem>>, %arg18: memref<1x2xf32, #tpu.memory_space<vmem>>) attributes {dimension_semantics = [#tpu.dimension_semantics<parallel>], iteration_bounds = array<i64: 1>, scalar_prefetch = 0 : i64, scratch_operands = 0 : i64, tpu.core_type = #tpu.core_type<tc>, window_params = [{transform_indices = @transform_0, window_bounds = array<i64: 8, 256>}, {transform_indices = @transform_1, window_bounds = array<i64: 2, 8, 256>}, {transform_indices = @transform_2, window_bounds = array<i64: 2, 2, 32>}, {pipeline_mode = #tpu.pipeline_mode<synchronous>, transform_indices = @transform_3, window_bounds = array<i64: 8, 8>}, {pipeline_mode = #tpu.pipeline_mode<synchronous>, transform_indices = @transform_4, window_bounds = array<i64: 8, 1>}, {pipeline_mode = #tpu.pipeline_mode<synchronous>, transform_indices = @transform_5, window_bounds = array<i64: 8, 32>}, {pipeline_mode = #tpu.pipeline_mode<synchronous>, transform_indices = @transform_6, window_bounds = array<i64: 8, 32>}, {pipeline_mode = #tpu.pipeline_mode<synchronous>, transform_indices = @transform_7, window_bounds = array<i64: 1, 32>}, {pipeline_mode = #tpu.pipeline_mode<synchronous>, transform_indices = @transform_8, window_bounds = array<i64: 1, 32>}, {pipeline_mode = #tpu.pipeline_mode<synchronous>, transform_indices = @transform_9, window_bounds = array<i64: 8, 32>}, {pipeline_mode = #tpu.pipeline_mode<synchronous>, transform_indices = @transform_10, window_bounds = array<i64: 8, 32>}, {pipeline_mode = #tpu.pipeline_mode<synchronous>, transform_indices = @transform_11, window_bounds = array<i64: 8, 1>}, {pipeline_mode = #tpu.pipeline_mode<synchronous>, transform_indices = @transform_12, window_bounds = array<i64: 8, 1>}, {pipeline_mode = #tpu.pipeline_mode<synchronous>, transform_indices = @transform_13, window_bounds = array<i64: 2, 8>}, {pipeline_mode = #tpu.pipeline_mode<synchronous>, transform_indices = @transform_14, window_bounds = array<i64: 8, 2>}, {transform_indices = @transform_15, window_bounds = array<i64: 1, 2>}, {transform_indices = @transform_16, window_bounds = array<i64: 1, 2>}, {transform_indices = @transform_17, window_bounds = array<i64: 1, 2>}]} {
    %c0 = arith.constant 0 : index
    %c0_0 = arith.constant 0 : index
    %0 = vector.load %arg1[%c0, %c0_0] : memref<8x256xf32, #tpu.memory_space<vmem>>, vector<8x256xf32>
    %cst = arith.constant 2.550000e+02 : f32
    %1 = vector.broadcast %cst : f32 to vector<8x256xf32>
    %2 = arith.mulf %0, %1 : vector<8x256xf32>
    %cst_1 = arith.constant 7.812500e-03 : f32
    %3 = vector.broadcast %cst_1 : f32 to vector<8x256xf32>
    %4 = arith.mulf %2, %3 : vector<8x256xf32>
    %cst_2 = arith.constant 1.000000e+00 : f32
    %5 = vector.broadcast %cst_2 : f32 to vector<8x256xf32>
    %6 = arith.subf %4, %5 : vector<8x256xf32>
    %cst_3 = arith.constant dense<0.000000e+00> : vector<8xf32>
    %7 = vector.multi_reduction <add>, %6, %cst_3 [1] : vector<8x256xf32> to vector<8xf32>
    %8 = vector.shape_cast %7 : vector<8xf32> to vector<8x1xf32>
    %cst_4 = arith.constant 2.560000e+02 : f32
    %9 = vector.broadcast %cst_4 : f32 to vector<8x1xf32>
    %10 = arith.divf %8, %9 : vector<8x1xf32>
    %c0_5 = arith.constant 0 : index
    %c0_6 = arith.constant 0 : index
    %11 = vector.load %arg14[%c0_5, %c0_6] : memref<2x8xf32, #tpu.memory_space<vmem>>, vector<2x8xf32>
    %c0_7 = arith.constant 0 : index
    %c0_8 = arith.constant 0 : index
    %12 = vector.load %arg6[%c0_7, %c0_8] : memref<8x32xf32, #tpu.memory_space<vmem>>, vector<8x32xf32>
    %13 = vector.broadcast %10 : vector<8x1xf32> to vector<8x32xf32>
    %14 = arith.mulf %13, %12 : vector<8x32xf32>
    %cst_9 = arith.constant dense<0.000000e+00> : vector<2x32xf32>
    %15 = tpu.matmul %11, %14, %cst_9 {dimension_numbers = #tpu.dot_dimension_numbers<[1], [0], [0], [1], [0, 0, 1, 1], [], []>} : vector<2x8xf32>, vector<8x32xf32>, vector<2x32xf32> -> vector<2x32xf32>
    %c0_10 = arith.constant 0 : index
    %c0_11 = arith.constant 0 : index
    %16 = vector.load %arg8[%c0_10, %c0_11] : memref<1x32xf32, #tpu.memory_space<vmem>>, vector<1x32xf32>
    %17 = vector.broadcast %16 : vector<1x32xf32> to vector<2x32xf32>
    %18 = arith.addf %15, %17 : vector<2x32xf32>
    %c0_12 = arith.constant 0 : index
    %c0_13 = arith.constant 0 : index
    %19 = vector.load %arg14[%c0_12, %c0_13] : memref<2x8xf32, #tpu.memory_space<vmem>>, vector<2x8xf32>
    %c0_14 = arith.constant 0 : index
    %c0_15 = arith.constant 0 : index
    %20 = vector.load %arg7[%c0_14, %c0_15] : memref<8x32xf32, #tpu.memory_space<vmem>>, vector<8x32xf32>
    %21 = vector.broadcast %10 : vector<8x1xf32> to vector<8x32xf32>
    %22 = arith.mulf %21, %20 : vector<8x32xf32>
    %cst_16 = arith.constant dense<0.000000e+00> : vector<2x32xf32>
    %23 = tpu.matmul %19, %22, %cst_16 {dimension_numbers = #tpu.dot_dimension_numbers<[1], [0], [0], [1], [0, 0, 1, 1], [], []>} : vector<2x8xf32>, vector<8x32xf32>, vector<2x32xf32> -> vector<2x32xf32>
    %c0_17 = arith.constant 0 : index
    %c0_18 = arith.constant 0 : index
    %24 = vector.load %arg9[%c0_17, %c0_18] : memref<1x32xf32, #tpu.memory_space<vmem>>, vector<1x32xf32>
    %25 = vector.broadcast %24 : vector<1x32xf32> to vector<2x32xf32>
    %26 = arith.addf %23, %25 : vector<2x32xf32>
    %cst_19 = arith.constant 5.000000e-01 : f32
    %27 = vector.broadcast %cst_19 : f32 to vector<2x32xf32>
    %28 = arith.mulf %27, %26 : vector<2x32xf32>
    %29 = math.exp %28 : vector<2x32xf32>
    %30 = arith.mulf %29, %29 : vector<2x32xf32>
    %31 = arith.mulf %18, %18 : vector<2x32xf32>
    %32 = arith.addf %30, %31 : vector<2x32xf32>
    %cst_20 = arith.constant 1.000000e+00 : f32
    %33 = vector.broadcast %cst_20 : f32 to vector<2x32xf32>
    %34 = arith.subf %32, %33 : vector<2x32xf32>
    %35 = arith.subf %34, %26 : vector<2x32xf32>
    %cst_21 = arith.constant dense<0.000000e+00> : vector<2xf32>
    %36 = vector.multi_reduction <add>, %35, %cst_21 [1] : vector<2x32xf32> to vector<2xf32>
    %cst_22 = arith.constant 5.000000e-01 : f32
    %37 = vector.broadcast %cst_22 : f32 to vector<2xf32>
    %38 = arith.mulf %37, %36 : vector<2xf32>
    %c0_23 = arith.constant 0 : index
    %c0_24 = arith.constant 0 : index
    %39 = vector.load %arg17[%c0_23, %c0_24] : memref<1x2xf32, #tpu.memory_space<vmem>>, vector<1x2xf32>
    %40 = vector.shape_cast %39 : vector<1x2xf32> to vector<2xf32>
    %41 = vector.shape_cast %38 : vector<2xf32> to vector<1x2xf32>
    tpu.vector_store %arg17[%c0_23, %c0_24], %41 {strides = array<i32>} : memref<1x2xf32, #tpu.memory_space<vmem>>, vector<1x2xf32>,
    %c0_25 = arith.constant 0 : index
    %c0_26 = arith.constant 0 : index
    %42 = vector.load %arg4[%c0_25, %c0_26] : memref<8x8xf32, #tpu.memory_space<vmem>>, vector<8x8xf32>
    %cst_27 = arith.constant dense<0.000000e+00> : vector<8x256xf32>
    %43 = tpu.matmul %42, %6, %cst_27 {dimension_numbers = #tpu.dot_dimension_numbers<[1], [0], [0], [1], [0, 0, 1, 1], [], []>} : vector<8x8xf32>, vector<8x256xf32>, vector<8x256xf32> -> vector<8x256xf32>
    %c0_28 = arith.constant 0 : index
    %c0_29 = arith.constant 0 : index
    %44 = vector.load %arg5[%c0_28, %c0_29] : memref<8x1xf32, #tpu.memory_space<vmem>>, vector<8x1xf32>
    %45 = vector.broadcast %44 : vector<8x1xf32> to vector<8x256xf32>
    %46 = arith.addf %43, %45 : vector<8x256xf32>
    %cst_30 = arith.constant 0.000000e+00 : f32
    %47 = vector.broadcast %cst_30 : f32 to vector<2x1xf32>
    %cst_31 = arith.constant 0.000000e+00 : f32
    %48 = vector.broadcast %cst_31 : f32 to vector<2x1xf32>
    %c0_32 = arith.constant 0 : index
    %c0_33 = arith.constant 0 : index
    %c0_34 = arith.constant 0 : index
    %49 = vector.load %arg2[%c0_32, %c0_33, %c0_34] : memref<2x8x256xf32, #tpu.memory_space<vmem>>, vector<1x8x256xf32>
    %50 = vector.shape_cast %49 : vector<1x8x256xf32> to vector<8x256xf32>
    %51 = arith.addf %46, %50 : vector<8x256xf32>
    %52 = math.absf %51 : vector<8x256xf32>
    %cst_35 = arith.constant 0.000000e+00 : f32
    %53 = vector.broadcast %cst_35 : f32 to vector<8x256xf32>
    %54 = arith.subf %53, %52 : vector<8x256xf32>
    %55 = math.exp %54 : vector<8x256xf32>
    %cst_36 = arith.constant 0.000000e+00 : f32
    %56 = vector.broadcast %cst_36 : f32 to vector<8x256xf32>
    %57 = arith.cmpf oge, %51, %56 : vector<8x256xf32>
    %cst_37 = arith.constant 1.000000e+00 : f32
    %58 = vector.broadcast %cst_37 : f32 to vector<8x256xf32>
    %59 = arith.select %57, %58, %55 : vector<8x256xi1>, vector<8x256xf32>
    %cst_38 = arith.constant 1.000000e+00 : f32
    %60 = vector.broadcast %cst_38 : f32 to vector<8x256xf32>
    %61 = arith.addf %60, %55 : vector<8x256xf32>
    %62 = arith.divf %59, %61 : vector<8x256xf32>
    %cst_39 = arith.constant 0.000000e+00 : f32
    %63 = vector.broadcast %cst_39 : f32 to vector<8x256xf32>
    %64 = arith.maximumf %51, %63 : vector<8x256xf32>
    %65 = math.log1p %55 : vector<8x256xf32>
    %66 = arith.addf %64, %65 : vector<8x256xf32>
    %cst_40 = arith.constant 2.000000e+00 : f32
    %67 = vector.broadcast %cst_40 : f32 to vector<8x256xf32>
    %68 = arith.mulf %67, %66 : vector<8x256xf32>
    %69 = arith.subf %68, %51 : vector<8x256xf32>
    %cst_41 = arith.constant 5.000000e-01 : f32
    %70 = vector.broadcast %cst_41 : f32 to vector<8x256xf32>
    %71 = arith.mulf %70, %50 : vector<8x256xf32>
    %72 = arith.mulf %71, %50 : vector<8x256xf32>
    %73 = arith.subf %69, %72 : vector<8x256xf32>
    %cst_42 = arith.constant dense<0.000000e+00> : vector<8xf32>
    %74 = vector.multi_reduction <add>, %73, %cst_42 [1] : vector<8x256xf32> to vector<8xf32>
    %75 = vector.shape_cast %74 : vector<8xf32> to vector<8x1xf32>
    %c0_43 = arith.constant 0 : index
    %c0_44 = arith.constant 0 : index
    %76 = vector.load %arg14[%c0_43, %c0_44] : memref<2x8xf32, #tpu.memory_space<vmem>>, vector<2x8xf32>
    %cst_45 = arith.constant dense<0.000000e+00> : vector<2x1xf32>
    %77 = tpu.matmul %76, %75, %cst_45 {dimension_numbers = #tpu.dot_dimension_numbers<[1], [0], [0], [1], [0, 0, 1, 1], [], []>} : vector<2x8xf32>, vector<8x1xf32>, vector<2x1xf32> -> vector<2x1xf32>
    %cst_46 = arith.constant 940.993041 : f32
    %78 = vector.broadcast %cst_46 : f32 to vector<2x1xf32>
    %79 = arith.subf %77, %78 : vector<2x1xf32>
    %80 = arith.addf %47, %79 : vector<2x1xf32>
    %cst_47 = arith.constant 7.812500e-03 : f32
    %81 = vector.broadcast %cst_47 : f32 to vector<8x256xf32>
    %82 = arith.mulf %62, %81 : vector<8x256xf32>
    %83 = arith.addf %6, %82 : vector<8x256xf32>
    %c0_48 = arith.constant 0 : index
    %c0_49 = arith.constant 0 : index
    %c0_50 = arith.constant 0 : index
    %84 = vector.load %arg3[%c0_48, %c0_49, %c0_50] : memref<2x2x32xf32, #tpu.memory_space<vmem>>, vector<2x1x32xf32>
    %85 = vector.shape_cast %84 : vector<2x1x32xf32> to vector<2x32xf32>
    %86 = arith.mulf %29, %85 : vector<2x32xf32>
    %87 = arith.addf %18, %86 : vector<2x32xf32>
    %c0_51 = arith.constant 0 : index
    %c0_52 = arith.constant 0 : index
    %88 = vector.load %arg15[%c0_51, %c0_52] : memref<8x2xf32, #tpu.memory_space<vmem>>, vector<8x2xf32>
    %cst_53 = arith.constant dense<0.000000e+00> : vector<8x32xf32>
    %89 = tpu.matmul %88, %87, %cst_53 {dimension_numbers = #tpu.dot_dimension_numbers<[1], [0], [0], [1], [0, 0, 1, 1], [], []>} : vector<8x2xf32>, vector<2x32xf32>, vector<8x32xf32> -> vector<8x32xf32>
    %c0_54 = arith.constant 0 : index
    %c0_55 = arith.constant 0 : index
    %90 = vector.load %arg10[%c0_54, %c0_55] : memref<8x32xf32, #tpu.memory_space<vmem>>, vector<8x32xf32>
    %91 = arith.mulf %89, %90 : vector<8x32xf32>
    %cst_56 = arith.constant dense<0.000000e+00> : vector<8xf32>
    %92 = vector.multi_reduction <add>, %91, %cst_56 [1] : vector<8x32xf32> to vector<8xf32>
    %93 = vector.shape_cast %92 : vector<8xf32> to vector<8x1xf32>
    %c0_57 = arith.constant 0 : index
    %c0_58 = arith.constant 0 : index
    %94 = vector.load %arg12[%c0_57, %c0_58] : memref<8x1xf32, #tpu.memory_space<vmem>>, vector<8x1xf32>
    %95 = arith.addf %93, %94 : vector<8x1xf32>
    %96 = math.tanh %95 : vector<8x1xf32>
    %c0_59 = arith.constant 0 : index
    %c0_60 = arith.constant 0 : index
    %97 = vector.load %arg11[%c0_59, %c0_60] : memref<8x32xf32, #tpu.memory_space<vmem>>, vector<8x32xf32>
    %98 = arith.mulf %89, %97 : vector<8x32xf32>
    %cst_61 = arith.constant dense<0.000000e+00> : vector<8xf32>
    %99 = vector.multi_reduction <add>, %98, %cst_61 [1] : vector<8x32xf32> to vector<8xf32>
    %100 = vector.shape_cast %99 : vector<8xf32> to vector<8x1xf32>
    %c0_62 = arith.constant 0 : index
    %c0_63 = arith.constant 0 : index
    %101 = vector.load %arg13[%c0_62, %c0_63] : memref<8x1xf32, #tpu.memory_space<vmem>>, vector<8x1xf32>
    %102 = arith.addf %100, %101 : vector<8x1xf32>
    %cst_64 = arith.constant 0.000000e+00 : f32
    %103 = vector.broadcast %cst_64 : f32 to vector<8x1xf32>
    %104 = arith.subf %103, %96 : vector<8x1xf32>
    %105 = math.exp %104 : vector<8x1xf32>
    %106 = vector.broadcast %102 : vector<8x1xf32> to vector<8x256xf32>
    %107 = arith.subf %83, %106 : vector<8x256xf32>
    %108 = vector.broadcast %105 : vector<8x1xf32> to vector<8x256xf32>
    %109 = arith.mulf %107, %108 : vector<8x256xf32>
    %110 = arith.mulf %109, %109 : vector<8x256xf32>
    %cst_65 = arith.constant dense<0.000000e+00> : vector<8xf32>
    %111 = vector.multi_reduction <add>, %110, %cst_65 [1] : vector<8x256xf32> to vector<8xf32>
    %112 = vector.shape_cast %111 : vector<8xf32> to vector<8x1xf32>
    %c0_66 = arith.constant 0 : index
    %c0_67 = arith.constant 0 : index
    %113 = vector.load %arg14[%c0_66, %c0_67] : memref<2x8xf32, #tpu.memory_space<vmem>>, vector<2x8xf32>
    %cst_68 = arith.constant dense<0.000000e+00> : vector<2x1xf32>
    %114 = tpu.matmul %113, %112, %cst_68 {dimension_numbers = #tpu.dot_dimension_numbers<[1], [0], [0], [1], [0, 0, 1, 1], [], []>} : vector<2x8xf32>, vector<8x1xf32>, vector<2x1xf32> -> vector<2x1xf32>
    %c0_69 = arith.constant 0 : index
    %c0_70 = arith.constant 0 : index
    %115 = vector.load %arg14[%c0_69, %c0_70] : memref<2x8xf32, #tpu.memory_space<vmem>>, vector<2x8xf32>
    %cst_71 = arith.constant dense<0.000000e+00> : vector<2x1xf32>
    %116 = tpu.matmul %115, %96, %cst_71 {dimension_numbers = #tpu.dot_dimension_numbers<[1], [0], [0], [1], [0, 0, 1, 1], [], []>} : vector<2x8xf32>, vector<8x1xf32>, vector<2x1xf32> -> vector<2x1xf32>
    %cst_72 = arith.constant -5.000000e-01 : f32
    %117 = vector.broadcast %cst_72 : f32 to vector<2x1xf32>
    %118 = arith.mulf %117, %114 : vector<2x1xf32>
    %cst_73 = arith.constant 940.993041 : f32
    %119 = vector.broadcast %cst_73 : f32 to vector<2x1xf32>
    %120 = arith.subf %118, %119 : vector<2x1xf32>
    %cst_74 = arith.constant 2.560000e+02 : f32
    %121 = vector.broadcast %cst_74 : f32 to vector<2x1xf32>
    %122 = arith.mulf %121, %116 : vector<2x1xf32>
    %123 = arith.subf %120, %122 : vector<2x1xf32>
    %124 = arith.addf %48, %123 : vector<2x1xf32>
    %c1 = arith.constant 1 : index
    %c0_75 = arith.constant 0 : index
    %c0_76 = arith.constant 0 : index
    %125 = vector.load %arg2[%c1, %c0_75, %c0_76] : memref<2x8x256xf32, #tpu.memory_space<vmem>>, vector<1x8x256xf32>
    %126 = vector.shape_cast %125 : vector<1x8x256xf32> to vector<8x256xf32>
    %127 = arith.addf %46, %126 : vector<8x256xf32>
    %128 = math.absf %127 : vector<8x256xf32>
    %cst_77 = arith.constant 0.000000e+00 : f32
    %129 = vector.broadcast %cst_77 : f32 to vector<8x256xf32>
    %130 = arith.subf %129, %128 : vector<8x256xf32>
    %131 = math.exp %130 : vector<8x256xf32>
    %cst_78 = arith.constant 0.000000e+00 : f32
    %132 = vector.broadcast %cst_78 : f32 to vector<8x256xf32>
    %133 = arith.cmpf oge, %127, %132 : vector<8x256xf32>
    %cst_79 = arith.constant 1.000000e+00 : f32
    %134 = vector.broadcast %cst_79 : f32 to vector<8x256xf32>
    %135 = arith.select %133, %134, %131 : vector<8x256xi1>, vector<8x256xf32>
    %cst_80 = arith.constant 1.000000e+00 : f32
    %136 = vector.broadcast %cst_80 : f32 to vector<8x256xf32>
    %137 = arith.addf %136, %131 : vector<8x256xf32>
    %138 = arith.divf %135, %137 : vector<8x256xf32>
    %cst_81 = arith.constant 0.000000e+00 : f32
    %139 = vector.broadcast %cst_81 : f32 to vector<8x256xf32>
    %140 = arith.maximumf %127, %139 : vector<8x256xf32>
    %141 = math.log1p %131 : vector<8x256xf32>
    %142 = arith.addf %140, %141 : vector<8x256xf32>
    %cst_82 = arith.constant 2.000000e+00 : f32
    %143 = vector.broadcast %cst_82 : f32 to vector<8x256xf32>
    %144 = arith.mulf %143, %142 : vector<8x256xf32>
    %145 = arith.subf %144, %127 : vector<8x256xf32>
    %cst_83 = arith.constant 5.000000e-01 : f32
    %146 = vector.broadcast %cst_83 : f32 to vector<8x256xf32>
    %147 = arith.mulf %146, %126 : vector<8x256xf32>
    %148 = arith.mulf %147, %126 : vector<8x256xf32>
    %149 = arith.subf %145, %148 : vector<8x256xf32>
    %cst_84 = arith.constant dense<0.000000e+00> : vector<8xf32>
    %150 = vector.multi_reduction <add>, %149, %cst_84 [1] : vector<8x256xf32> to vector<8xf32>
    %151 = vector.shape_cast %150 : vector<8xf32> to vector<8x1xf32>
    %c0_85 = arith.constant 0 : index
    %c0_86 = arith.constant 0 : index
    %152 = vector.load %arg14[%c0_85, %c0_86] : memref<2x8xf32, #tpu.memory_space<vmem>>, vector<2x8xf32>
    %cst_87 = arith.constant dense<0.000000e+00> : vector<2x1xf32>
    %153 = tpu.matmul %152, %151, %cst_87 {dimension_numbers = #tpu.dot_dimension_numbers<[1], [0], [0], [1], [0, 0, 1, 1], [], []>} : vector<2x8xf32>, vector<8x1xf32>, vector<2x1xf32> -> vector<2x1xf32>
    %cst_88 = arith.constant 940.993041 : f32
    %154 = vector.broadcast %cst_88 : f32 to vector<2x1xf32>
    %155 = arith.subf %153, %154 : vector<2x1xf32>
    %156 = arith.addf %80, %155 : vector<2x1xf32>
    %cst_89 = arith.constant 7.812500e-03 : f32
    %157 = vector.broadcast %cst_89 : f32 to vector<8x256xf32>
    %158 = arith.mulf %138, %157 : vector<8x256xf32>
    %159 = arith.addf %6, %158 : vector<8x256xf32>
    %c0_90 = arith.constant 0 : index
    %c1_91 = arith.constant 1 : index
    %c0_92 = arith.constant 0 : index
    %160 = vector.load %arg3[%c0_90, %c1_91, %c0_92] : memref<2x2x32xf32, #tpu.memory_space<vmem>>, vector<2x1x32xf32>
    %161 = vector.shape_cast %160 : vector<2x1x32xf32> to vector<2x32xf32>
    %162 = arith.mulf %29, %161 : vector<2x32xf32>
    %163 = arith.addf %18, %162 : vector<2x32xf32>
    %c0_93 = arith.constant 0 : index
    %c0_94 = arith.constant 0 : index
    %164 = vector.load %arg15[%c0_93, %c0_94] : memref<8x2xf32, #tpu.memory_space<vmem>>, vector<8x2xf32>
    %cst_95 = arith.constant dense<0.000000e+00> : vector<8x32xf32>
    %165 = tpu.matmul %164, %163, %cst_95 {dimension_numbers = #tpu.dot_dimension_numbers<[1], [0], [0], [1], [0, 0, 1, 1], [], []>} : vector<8x2xf32>, vector<2x32xf32>, vector<8x32xf32> -> vector<8x32xf32>
    %c0_96 = arith.constant 0 : index
    %c0_97 = arith.constant 0 : index
    %166 = vector.load %arg10[%c0_96, %c0_97] : memref<8x32xf32, #tpu.memory_space<vmem>>, vector<8x32xf32>
    %167 = arith.mulf %165, %166 : vector<8x32xf32>
    %cst_98 = arith.constant dense<0.000000e+00> : vector<8xf32>
    %168 = vector.multi_reduction <add>, %167, %cst_98 [1] : vector<8x32xf32> to vector<8xf32>
    %169 = vector.shape_cast %168 : vector<8xf32> to vector<8x1xf32>
    %c0_99 = arith.constant 0 : index
    %c0_100 = arith.constant 0 : index
    %170 = vector.load %arg12[%c0_99, %c0_100] : memref<8x1xf32, #tpu.memory_space<vmem>>, vector<8x1xf32>
    %171 = arith.addf %169, %170 : vector<8x1xf32>
    %172 = math.tanh %171 : vector<8x1xf32>
    %c0_101 = arith.constant 0 : index
    %c0_102 = arith.constant 0 : index
    %173 = vector.load %arg11[%c0_101, %c0_102] : memref<8x32xf32, #tpu.memory_space<vmem>>, vector<8x32xf32>
    %174 = arith.mulf %165, %173 : vector<8x32xf32>
    %cst_103 = arith.constant dense<0.000000e+00> : vector<8xf32>
    %175 = vector.multi_reduction <add>, %174, %cst_103 [1] : vector<8x32xf32> to vector<8xf32>
    %176 = vector.shape_cast %175 : vector<8xf32> to vector<8x1xf32>
    %c0_104 = arith.constant 0 : index
    %c0_105 = arith.constant 0 : index
    %177 = vector.load %arg13[%c0_104, %c0_105] : memref<8x1xf32, #tpu.memory_space<vmem>>, vector<8x1xf32>
    %178 = arith.addf %176, %177 : vector<8x1xf32>
    %cst_106 = arith.constant 0.000000e+00 : f32
    %179 = vector.broadcast %cst_106 : f32 to vector<8x1xf32>
    %180 = arith.subf %179, %172 : vector<8x1xf32>
    %181 = math.exp %180 : vector<8x1xf32>
    %182 = vector.broadcast %178 : vector<8x1xf32> to vector<8x256xf32>
    %183 = arith.subf %159, %182 : vector<8x256xf32>
    %184 = vector.broadcast %181 : vector<8x1xf32> to vector<8x256xf32>
    %185 = arith.mulf %183, %184 : vector<8x256xf32>
    %186 = arith.mulf %185, %185 : vector<8x256xf32>
    %cst_107 = arith.constant dense<0.000000e+00> : vector<8xf32>
    %187 = vector.multi_reduction <add>, %186, %cst_107 [1] : vector<8x256xf32> to vector<8xf32>
    %188 = vector.shape_cast %187 : vector<8xf32> to vector<8x1xf32>
    %c0_108 = arith.constant 0 : index
    %c0_109 = arith.constant 0 : index
    %189 = vector.load %arg14[%c0_108, %c0_109] : memref<2x8xf32, #tpu.memory_space<vmem>>, vector<2x8xf32>
    %cst_110 = arith.constant dense<0.000000e+00> : vector<2x1xf32>
    %190 = tpu.matmul %189, %188, %cst_110 {dimension_numbers = #tpu.dot_dimension_numbers<[1], [0], [0], [1], [0, 0, 1, 1], [], []>} : vector<2x8xf32>, vector<8x1xf32>, vector<2x1xf32> -> vector<2x1xf32>
    %c0_111 = arith.constant 0 : index
    %c0_112 = arith.constant 0 : index
    %191 = vector.load %arg14[%c0_111, %c0_112] : memref<2x8xf32, #tpu.memory_space<vmem>>, vector<2x8xf32>
    %cst_113 = arith.constant dense<0.000000e+00> : vector<2x1xf32>
    %192 = tpu.matmul %191, %172, %cst_113 {dimension_numbers = #tpu.dot_dimension_numbers<[1], [0], [0], [1], [0, 0, 1, 1], [], []>} : vector<2x8xf32>, vector<8x1xf32>, vector<2x1xf32> -> vector<2x1xf32>
    %cst_114 = arith.constant -5.000000e-01 : f32
    %193 = vector.broadcast %cst_114 : f32 to vector<2x1xf32>
    %194 = arith.mulf %193, %190 : vector<2x1xf32>
    %cst_115 = arith.constant 940.993041 : f32
    %195 = vector.broadcast %cst_115 : f32 to vector<2x1xf32>
    %196 = arith.subf %194, %195 : vector<2x1xf32>
    %cst_116 = arith.constant 2.560000e+02 : f32
    %197 = vector.broadcast %cst_116 : f32 to vector<2x1xf32>
    %198 = arith.mulf %197, %192 : vector<2x1xf32>
    %199 = arith.subf %196, %198 : vector<2x1xf32>
    %200 = arith.addf %124, %199 : vector<2x1xf32>
    %cst_117 = arith.constant 5.000000e-01 : f32
    %201 = vector.broadcast %cst_117 : f32 to vector<2x1xf32>
    %202 = arith.mulf %156, %201 : vector<2x1xf32>
    %203 = vector.shape_cast %202 : vector<2x1xf32> to vector<2xf32>
    %c0_118 = arith.constant 0 : index
    %c0_119 = arith.constant 0 : index
    %204 = vector.load %arg18[%c0_118, %c0_119] : memref<1x2xf32, #tpu.memory_space<vmem>>, vector<1x2xf32>
    %205 = vector.shape_cast %204 : vector<1x2xf32> to vector<2xf32>
    %206 = vector.shape_cast %203 : vector<2xf32> to vector<1x2xf32>
    tpu.vector_store %arg18[%c0_118, %c0_119], %206 {strides = array<i32>} : memref<1x2xf32, #tpu.memory_space<vmem>>, vector<1x2xf32>,
    %cst_120 = arith.constant -5.000000e-01 : f32
    %207 = vector.broadcast %cst_120 : f32 to vector<2x1xf32>
    %208 = arith.mulf %200, %207 : vector<2x1xf32>
    %209 = vector.shape_cast %208 : vector<2x1xf32> to vector<2xf32>
    %c0_121 = arith.constant 0 : index
    %c0_122 = arith.constant 0 : index
    %210 = vector.load %arg16[%c0_121, %c0_122] : memref<1x2xf32, #tpu.memory_space<vmem>>, vector<1x2xf32>
    %211 = vector.shape_cast %210 : vector<1x2xf32> to vector<2xf32>
    %212 = vector.shape_cast %209 : vector<2xf32> to vector<1x2xf32>
    tpu.vector_store %arg16[%c0_121, %c0_122], %212 {strides = array<i32>} : memref<1x2xf32, #tpu.memory_space<vmem>>, vector<1x2xf32>,
    return
  }
  func.func @transform_0(%arg0: i32) -> (i32, i32) {
    %c0_i32 = arith.constant 0 : i32
    %c0_i32_0 = arith.constant 0 : i32
    return %arg0, %c0_i32 : i32, i32
  }
  func.func @transform_1(%arg0: i32) -> (i32, i32, i32) {
    %c0_i32 = arith.constant 0 : i32
    %c0_i32_0 = arith.constant 0 : i32
    %c0_i32_1 = arith.constant 0 : i32
    return %c0_i32, %arg0, %c0_i32_0 : i32, i32, i32
  }
  func.func @transform_2(%arg0: i32) -> (i32, i32, i32) {
    %c0_i32 = arith.constant 0 : i32
    %c0_i32_0 = arith.constant 0 : i32
    %c0_i32_1 = arith.constant 0 : i32
    return %arg0, %c0_i32, %c0_i32_0 : i32, i32, i32
  }
  func.func @transform_3(%arg0: i32) -> (i32, i32) {
    %c0_i32 = arith.constant 0 : i32
    %c0_i32_0 = arith.constant 0 : i32
    %c0_i32_1 = arith.constant 0 : i32
    return %c0_i32, %c0_i32_0 : i32, i32
  }
  func.func @transform_4(%arg0: i32) -> (i32, i32) {
    %c0_i32 = arith.constant 0 : i32
    %c0_i32_0 = arith.constant 0 : i32
    %c0_i32_1 = arith.constant 0 : i32
    return %c0_i32, %c0_i32_0 : i32, i32
  }
  func.func @transform_5(%arg0: i32) -> (i32, i32) {
    %c0_i32 = arith.constant 0 : i32
    %c0_i32_0 = arith.constant 0 : i32
    %c0_i32_1 = arith.constant 0 : i32
    return %c0_i32, %c0_i32_0 : i32, i32
  }
  func.func @transform_6(%arg0: i32) -> (i32, i32) {
    %c0_i32 = arith.constant 0 : i32
    %c0_i32_0 = arith.constant 0 : i32
    %c0_i32_1 = arith.constant 0 : i32
    return %c0_i32, %c0_i32_0 : i32, i32
  }
  func.func @transform_7(%arg0: i32) -> (i32, i32) {
    %c0_i32 = arith.constant 0 : i32
    %c0_i32_0 = arith.constant 0 : i32
    %c0_i32_1 = arith.constant 0 : i32
    return %c0_i32, %c0_i32_0 : i32, i32
  }
  func.func @transform_8(%arg0: i32) -> (i32, i32) {
    %c0_i32 = arith.constant 0 : i32
    %c0_i32_0 = arith.constant 0 : i32
    %c0_i32_1 = arith.constant 0 : i32
    return %c0_i32, %c0_i32_0 : i32, i32
  }
  func.func @transform_9(%arg0: i32) -> (i32, i32) {
    %c0_i32 = arith.constant 0 : i32
    %c0_i32_0 = arith.constant 0 : i32
    %c0_i32_1 = arith.constant 0 : i32
    return %c0_i32, %c0_i32_0 : i32, i32
  }
  func.func @transform_10(%arg0: i32) -> (i32, i32) {
    %c0_i32 = arith.constant 0 : i32
    %c0_i32_0 = arith.constant 0 : i32
    %c0_i32_1 = arith.constant 0 : i32
    return %c0_i32, %c0_i32_0 : i32, i32
  }
  func.func @transform_11(%arg0: i32) -> (i32, i32) {
    %c0_i32 = arith.constant 0 : i32
    %c0_i32_0 = arith.constant 0 : i32
    %c0_i32_1 = arith.constant 0 : i32
    return %c0_i32, %c0_i32_0 : i32, i32
  }
  func.func @transform_12(%arg0: i32) -> (i32, i32) {
    %c0_i32 = arith.constant 0 : i32
    %c0_i32_0 = arith.constant 0 : i32
    %c0_i32_1 = arith.constant 0 : i32
    return %c0_i32, %c0_i32_0 : i32, i32
  }
  func.func @transform_13(%arg0: i32) -> (i32, i32) {
    %c0_i32 = arith.constant 0 : i32
    %c0_i32_0 = arith.constant 0 : i32
    %c0_i32_1 = arith.constant 0 : i32
    return %c0_i32, %c0_i32_0 : i32, i32
  }
  func.func @transform_14(%arg0: i32) -> (i32, i32) {
    %c0_i32 = arith.constant 0 : i32
    %c0_i32_0 = arith.constant 0 : i32
    %c0_i32_1 = arith.constant 0 : i32
    return %c0_i32, %c0_i32_0 : i32, i32
  }
  func.func @transform_15(%arg0: i32) -> (i32, i32) {
    %c0_i32 = arith.constant 0 : i32
    %c0_i32_0 = arith.constant 0 : i32
    return %arg0, %c0_i32 : i32, i32
  }
  func.func @transform_16(%arg0: i32) -> (i32, i32) {
    %c0_i32 = arith.constant 0 : i32
    %c0_i32_0 = arith.constant 0 : i32
    return %arg0, %c0_i32 : i32, i32
  }
  func.func @transform_17(%arg0: i32) -> (i32, i32) {
    %c0_i32 = arith.constant 0 : i32
    %c0_i32_0 = arith.constant 0 : i32
    return %arg0, %c0_i32 : i32, i32
  }
}

</mosaic_0001>

<bundles_post_ra>
// kernel: tpu_custom_call.1
= control target key start
LH: loop header
LB: loop body
LE: loop exit
PB: predicated region body
PF: predicated region fallthrough
CT: control target
= control target key end

     0   :  { %s1933_s0 = inlined_call_operand.hbm [shape: f32[8,256], index: 0, kind: input, shape index: {}]   ;;  %s1934_s1 = inlined_call_operand.vmem [shape: f32[2,8,256], index: 1, kind: input, shape index: {}]   ;;  %s1935_s2 = inlined_call_operand.hbm [shape: f32[2,2,32], index: 2, kind: input, shape index: {}]   ;;  %s1936_s3 = inlined_call_operand.vmem [shape: f32[8,8], index: 3, kind: input, shape index: {}]   ;;  %s1937_s4 = inlined_call_operand.vmem [shape: f32[8,1], index: 4, kind: input, shape index: {}]   ;;  %s1938_s5 = inlined_call_operand.vmem [shape: f32[8,32], index: 5, kind: input, shape index: {}]   ;;  %s1939_s6 = inlined_call_operand.vmem [shape: f32[8,32], index: 6, kind: input, shape index: {}]   ;;  %s1940_s7 = inlined_call_operand.hbm [shape: f32[1,32], index: 7, kind: input, shape index: {}]   ;;  %s1941_s8 = inlined_call_operand.hbm [shape: f32[1,32], index: 8, kind: input, shape index: {}]   ;;  %s1942_s9 = inlined_call_operand.vmem [shape: f32[8,32], index: 9, kind: input, shape index: {}]   ;;  %s1943_s10 = inlined_call_operand.vmem [shape: f32[8,32], index: 10, kind: input, shape index: {}]   ;;  %s1944_s11 = inlined_call_operand.vmem [shape: f32[8,1], index: 11, kind: input, shape index: {}]   ;;  %s1945_s12 = inlined_call_operand.vmem [shape: f32[8,1], index: 12, kind: input, shape index: {}]   ;;  %s1946_s13 = inlined_call_operand.vmem [shape: f32[2,8], index: 13, kind: input, shape index: {}]   ;;  %s1947_s14 = inlined_call_operand.vmem [shape: f32[8,2], index: 14, kind: input, shape index: {}]   ;;  %s1948_s15 = inlined_call_operand.hbm [shape: f32[1,2], index: 15, kind: output, shape index: {0}]   ;;  %s1949_s16 = inlined_call_operand.hbm [shape: f32[1,2], index: 16, kind: output, shape index: {1}]   ;;  %s1950_s17 = inlined_call_operand.hbm [shape: f32[1,2], index: 17, kind: output, shape index: {2}]  }
   0x1   :  { %1955 = sst [smem:[#allocation19_spill]] %s1933_s0 }
   0x2   :  { %1956 = sst [smem:[#allocation20_spill]] %s1934_s1 }
   0x3   :  { %1957 = sst [smem:[#allocation21_spill]] %s1948_s15 }
   0x4   :  { %1958 = sst [smem:[#allocation22_spill]] %s1950_s17 }
   0x5   :  { %23 = vsyncpa [#allocation3], 0 }
   0x6   :  { %24 = vsyncpa [#allocation6], 0 }
   0x7   :  { %25 = vsyncpa [#allocation9], 0 }
   0x8   :  { %26 = vsyncpa [#allocation4], 0 }
   0x9   :  { %27 = vsyncpa [#allocation12], 0  ;;  %s1563_s24 = smov [#allocation5]   ;;  %s1399_s28 = scalar_lea.hbm %s1935_s2, 64 }
   0xa   :  { %s45_s25 = sshll.u32 %s1563_s24, 4  ;;  %p1400_p0 = scmp.ne.s32.totalorder %s1935_s2, %s1399_s28  ;;  %s46_s25 = int_to_ptr.vmem [resolvable:$true] %s45_s25 }
   0xb   :  { %p1403_p1 = scmp.lt.u32.totalorder %s1399_s28, %s1935_s2 }
   0xd   :  { %p1405_p2 = pnand %p1403_p1, %p1400_p0 }
   0xf   :  { %1408 = shalt.err (!%p1405_p2)
}
  0x10   :  { %s1409_s19 = scalar_lea.vmem %s46_s25, 64  ;;  %p1414_p4 = scmp.lt.s32.totalorder %s46_s25, %s46_s25 }
  0x11   :  { %p1410_p3 = scmp.ne.s32.totalorder %s46_s25, %s1409_s19  ;;  %p1415_p5 = scmp.lt.s32.totalorder %s1409_s19, %s1409_s19 }
  0x13   :  { %p1416_p6 = por %p1415_p5, %p1414_p4 }
  0x15   :  { %p1417_p7 = pnand %p1416_p6, %p1410_p3 }
  0x17   :  { %1420 = shalt.err (!%p1417_p7)
}
  0x18   :  { %s1564_s1 = smov 32   ;;  %s1565_s20 = smov 2  }
  0x19   :  { %51 = dma.hbm_to_vmem [thread:$0]  %s1935_s2, 64, %s46_s25, [#allocation6], %s1564_s1, %s1564_s1, %s1565_s20  }
  0x1a   :  { %s1566_s23 = smov [#allocation2]   ;;  %s1567_s26 = smov [#allocation7]  }
  0x1b   :  { %s34_s24 = sshll.u32 %s1566_s23, 4  ;;  %s66_s27 = sshll.u32 %s1567_s26, 4  ;;  %s35_s24 = int_to_ptr.vmem [resolvable:$true] %s34_s24  ;;  %s67_s27 = int_to_ptr.vmem [resolvable:$true] %s66_s27 }
  0x1c   :  { %s1959_s0 = sld [smem:[#allocation19_spill]] }
  0x22   :  { %s1421_s30 = scalar_lea.hbm %s1959_s0, 256 }
  0x23   :  { %p1422_p8 = scmp.ne.s32.totalorder %s1959_s0, %s1421_s30  ;;  %p1425_p9 = scmp.lt.u32.totalorder %s1421_s30, %s1959_s0 }
  0x25   :  { %p1427_p10 = pnand %p1425_p9, %p1422_p8 }
  0x27   :  { %1430 = shalt.err (!%p1427_p10)
}
  0x28   :  { %s1431_s2 = scalar_lea.vmem %s35_s24, 256  ;;  %p1436_p12 = scmp.lt.s32.totalorder %s35_s24, %s35_s24 }
  0x29   :  { %p1432_p11 = scmp.ne.s32.totalorder %s35_s24, %s1431_s2  ;;  %p1437_p13 = scmp.lt.s32.totalorder %s1431_s2, %s1431_s2 }
  0x2b   :  { %p1438_p0 = por %p1437_p13, %p1436_p12 }
  0x2d   :  { %p1439_p1 = pnand %p1438_p0, %p1432_p11 }
  0x2f   :  { %1442 = shalt.err (!%p1439_p1)
}
  0x30   :  { %37 = dma.hbm_to_vmem [thread:$0]  %s1959_s0, 256, %s35_s24, [#allocation3]  }
  0x31   :  { %s1443_s22 = scalar_lea.hbm %s1940_s7, 16 }
  0x32   :  { %p1444_p2 = scmp.ne.s32.totalorder %s1940_s7, %s1443_s22  ;;  %p1447_p3 = scmp.lt.u32.totalorder %s1443_s22, %s1940_s7 }
  0x34   :  { %p1449_p4 = pnand %p1447_p3, %p1444_p2 }
  0x36   :  { %1452 = shalt.err (!%p1449_p4)
}
  0x37   :  { %s1453_s28 = scalar_lea.vmem %s67_s27, 16  ;;  %s1457_s29 = scalar_lea.vmem %s67_s27, 32 }
  0x38   :  { %p1454_p5 = scmp.ne.s32.totalorder %s67_s27, %s1453_s28  ;;  %p1458_p6 = scmp.lt.s32.totalorder %s67_s27, %s67_s27 }
  0x39   :  { %p1459_p7 = scmp.lt.s32.totalorder %s1457_s29, %s1453_s28 }
  0x3b   :  { %p1460_p8 = por %p1459_p7, %p1458_p6 }
  0x3d   :  { %p1461_p9 = pnand %p1460_p8, %p1454_p5 }
  0x3f   :  { %1464 = shalt.err (!%p1461_p9)
}
  0x40   :  { %69 = dma.hbm_to_vmem [thread:$0]  %s1940_s7, 16, %s67_s27, [#allocation6]  }
  0x41   :  { %s1568_s30 = smov [#allocation8]   ;;  %s1465_s25 = scalar_lea.hbm %s1941_s8, 16 }
  0x42   :  { %s76_s18 = sshll.u32 %s1568_s30, 4  ;;  %p1466_p10 = scmp.ne.s32.totalorder %s1941_s8, %s1465_s25  ;;  %s77_s18 = int_to_ptr.vmem [resolvable:$true] %s76_s18 }
  0x43   :  { %p1469_p11 = scmp.lt.u32.totalorder %s1465_s25, %s1941_s8 }
  0x45   :  { %p1471_p12 = pnand %p1469_p11, %p1466_p10 }
  0x47   :  { %1474 = shalt.err (!%p1471_p12)
}
  0x48   :  { %s1475_s15 = scalar_lea.vmem %s77_s18, 16  ;;  %s1479_s7 = scalar_lea.vmem %s77_s18, 32 }
  0x49   :  { %p1476_p13 = scmp.ne.s32.totalorder %s77_s18, %s1475_s15  ;;  %p1480_p0 = scmp.lt.s32.totalorder %s77_s18, %s77_s18 }
  0x4a   :  { %p1481_p1 = scmp.lt.s32.totalorder %s1479_s7, %s1475_s15 }
  0x4c   :  { %p1482_p2 = por %p1481_p1, %p1480_p0 }
  0x4e   :  { %p1483_p3 = pnand %p1482_p2, %p1476_p13 }
  0x50   :  { %1486 = shalt.err (!%p1483_p3)
}
  0x51   :  { %79 = dma.hbm_to_vmem [thread:$0]  %s1941_s8, 16, %s77_s18, [#allocation9]  }
  0x52   :  { %1553 = dma.done.wait [#allocation3], 256  }
  0x53   :  { %1554 = vsyncadd [#allocation3], 4294967040 }
  0x54   :  { %1555 = dma.done.wait [#allocation6], 80  }
  0x55   :  { %1556 = vsyncadd [#allocation6], 4294967216 }
  0x56   :  { %1557 = dma.done.wait [#allocation9], 16  }
  0x57   :  { %1558 = vsyncadd [#allocation9], 4294967280  ;;  %v104_v0 = vld [vmem:[#allocation2] sm:$0xff]  ;;  %v105_v1 = vld [vmem:[#allocation2 + $0x8] sm:$0xff]  ;;  %v1569_v9 = vmov 0.0   ;;  %vm1570_vm0 = vmmov 0  }
  0x58   :  { %v106_v2 = vmul.f32 255.0, %v104_v0  ;;  %v107_v3 = vmul.f32 255.0, %v105_v1  ;;  %1297 = vmatprep.subr.mxu0 %v1569_v9  ;;  %1302 = vmatprep.subr.mxu1 %v1569_v9  ;;  %v118_v11 = vld [vmem:[%s1938_s5] sm:$0xff]  ;;  %vm127_vm1 = vcmask 64512   ;;  %v1257_v18 = vld [vmem:[#allocation8] ss:$0 sm:$0xff] }
  0x59   :  { %1304 = vmatprep.mubr.msk.f32.mxu1 %vm1570_vm0, %v1569_v9  ;;  %1299 = vmatprep.mubr.msk.f32.mxu0 %vm1570_vm0, %v1569_v9  ;;  %v201_v12 = vld [vmem:[%s1939_s6] sm:$0xff]  ;;  %v522_v26 = vld [vmem:[#allocation5 + $0x2] sm:$0x1]  ;;  %v928_v27 = vld [vmem:[#allocation5 + $0x3] sm:$0x1]  ;;  %vm526_vm2 = vcmask 1041409  }
  0x5a   :  { %v108_v4 = vmul.f32 0.0078125, %v106_v2  ;;  %v109_v5 = vmul.f32 0.0078125, %v107_v3  ;;  %v117_v16 = vld [vmem:[%s1946_s13] sm:$0x3]  ;;  %v1255_v28 = vld [vmem:[#allocation7] ss:$0 sm:$0xff] }
  0x5b   :  { %v303_v17 = vld [vmem:[%s1936_s3] sm:$0xff]  ;;  %v525_v29 = vrot.slane %v522_v26, 7  ;;  %v931_v30 = vrot.slane %v928_v27, 7  ;;  %v521_v32 = vld [vmem:[#allocation5] sm:$0x1]  ;;  %vm536_vm3 = vcmask 1041408  }
  0x5c   :  { %v1713_v6 = vadd.f32 -1.0, %v108_v4  ;;  %v1715_v7 = vadd.f32 -1.0, %v109_v5  ;;  %v927_v33 = vld [vmem:[#allocation5 + $0x1] sm:$0x1]  ;;  %v531_v43 = vld [vmem:[%s1947_s14] sm:$0xff]  ;;  %vm532_vm4 = vcmask 15360  }
  0x5d   :  { %v527_v34 = vsel %vm526_vm2, %v525_v29, %v521_v32  ;;  %v932_v35 = vsel %vm526_vm2, %v931_v30, %v927_v33  ;;  %v610_v49 = vld [vmem:[%s1942_s9] sm:$0xff]  ;;  %vm612_vm5 = vcmask 261120   ;;  %v1571_v59 = vmov 0   ;;  %s1960_s15 = sld [smem:[#allocation20_spill]]  ;;  %s1572_s23 = smov [#allocation11]  }
  0x5e   :  { %v112_v8 = vadd.f32 %v1715_v7, %v1713_v6  ;;  %v616_v54 = vld [vmem:[%s1944_s11] sm:$0xff]  ;;  %1363 = vset.pattern.permute.xlu1 %v1571_v59  ;;  %1364 = vset.pattern.permute.xlu0 %v1571_v59  ;;  %vm288_vm14 = vcmask 254976   ;;  %vm301_vm15 = vcmask 8192   ;;  %s1225_s26 = sshll.u32 %s1572_s23, 4  ;;  %s1226_s26 = int_to_ptr.vmem [resolvable:$true] %s1225_s26 }
  0x5f   :  { %v1774_v57 = vld [vmem:[%s1946_s13] sm:$0x3]  ;;  %s1487_s28 = scalar_lea.vmem %s1226_s26, 16  ;;  %s1491_s29 = scalar_lea.vmem %s1226_s26, 32 }
  0x60   :  { %113 = vadd.xlane.f32.xlu0 %v112_v8  ;;  %v619_v62 = vld [vmem:[%s1943_s10] sm:$0xff]  ;;  %p1488_p4 = scmp.ne.s32.totalorder %s1226_s26, %s1487_s28  ;;  %p1492_p5 = scmp.lt.s32.totalorder %s1226_s26, %s1226_s26 }
  0x61   :  { %p1493_p6 = scmp.lt.s32.totalorder %s1491_s29, %s1487_s28 }
  0x63   :  { %p1494_p7 = por %p1493_p6, %p1492_p5 }
  0x65   :  { %p1495_p8 = pnand %p1494_p7, %p1488_p4 }
  0xed   :  { %v114_v10 = vpop.xlane.xlu0 %113 }
  0xee   :  { %v116_v13 = vmul.f32 0.00390625, %v114_v10 }
  0xf0   :  { %v119_v14 = vmul.f32 %v118_v11, %v116_v13  ;;  %v202_v15 = vmul.f32 %v201_v12, %v116_v13  ;;  %v304_v12 = vld [vmem:[%s1937_s4] sm:$0xff] }
  0xf2   :  { %1298 = vmatpush3.msra.mxu0 %v119_v14  ;;  %1303 = vmatpush3.msra.mxu1 %v202_v15  ;;  %v624_v14 = vld [vmem:[%s1945_s12] sm:$0xff] }
  0xf3   :  { %1305 = vmatmul.mubr.msk.f32.vlgmr.msra.gmra.mrb[0].mxu1 %vm127_vm1, %v117_v16  ;;  %1300 = vmatmul.mubr.msk.f32.vlgmr.msra.gmra.mrb[0].mxu0 %vm127_vm1, %v117_v16 }
  0xf4   :  { %313 = vmatprep.subr.mxu0 %v1715_v7  ;;  %377 = vmatprep.mubr.f32.mxu0 %v1569_v9 }
  0xf5   :  { %314 = vmatpush1.msra.mxu0 %v1713_v6  ;;  %1307 = vmatprep.subr.mxu1 %v1569_v9 }
  0xf6   :  { %1312 = vmatprep.subr.mxu0 %v1569_v9  ;;  %1309 = vmatprep.mubr.msk.f32.mxu1 %vm1570_vm0, %v1569_v9 }
  0xf7   :  { %1260 = vmatmul.mubr.msk.f32.vlgmr.msra.gmra.mrb[2].mxu0 %vm127_vm1, %v303_v17 }
  0xf8   :  { %1314 = vmatprep.mubr.msk.f32.mxu0 %vm1570_vm0, %v1569_v9 }
 0x1c6   :  { %v276_v19 = vpop.f32.mrb[0].mxu1  ;;  %v197_v20 = vpop.f32.mrb[0].mxu0 }
 0x1c7   :  { %v1749_v21 = vadd.f32 %v1257_v18, %v276_v19  ;;  %v1306_v22 = vpop.f32.mrb[1].mxu1  ;;  %v1301_v23 = vpop.f32.mrb[1].mxu0  ;;  %v198_v31 = vadd.f32 %v1255_v28, %v197_v20 }
 0x1c8   :  { %v1803_v22 = vld [vmem:[%s1960_s15] sm:$0xff]  ;;  %v1808_v23 = vld [vmem:[%s1960_s15 + $0x8] sm:$0xff] }
 0x1c9   :  { %v280_v24 = vmul.f32 0.5, %v1749_v21  ;;  %v284_v36 = vmul.f32 %v198_v31, %v198_v31 }
 0x1ca   :  { %v379_v47 = vpop.f32.mrb[2].mxu0 }
 0x1cb   :  { %v281_v25 = vmul.f32 1.442695, %v280_v24  ;;  %v381_v48 = vpop.f32.mrb[3].mxu0  ;;  %v1813_v24 = vld [vmem:[%s1960_s15 + $0x10] sm:$0xff] }
 0x1cd   :  { %1365 = vpow2.f32 %v281_v25  ;;  %v1818_v25 = vld [vmem:[%s1960_s15 + $0x18] sm:$0xff] }
 0x1d7   :  { %v1366_v37 = vpop.eup %1365 }
 0x1d8   :  { %v529_v38 = vmul.f32 %v1366_v37, %v527_v34  ;;  %v934_v39 = vmul.f32 %v1366_v37, %v932_v35  ;;  %v283_v40 = vmul.f32 %v1366_v37, %v1366_v37 }
 0x1da   :  { %v530_v41 = vadd.f32 %v529_v38, %v198_v31  ;;  %v935_v42 = vadd.f32 %v934_v39, %v198_v31  ;;  %v285_v44 = vadd.f32 %v284_v36, %v283_v40 }
 0x1dc   :  { %1313 = vmatpush3.msk.msra.mxu0 %vm536_vm3, %v530_v41  ;;  %v1756_v45 = vadd.f32 -1.0, %v285_v44 }
 0x1dd   :  { %1315 = vmatmul.mubr.msk.f32.vlgmr.msra.gmra.mrb[4].mxu0 %vm532_vm4, %v531_v43  ;;  %1322 = vmatprep.subr.mxu0 %v1569_v9 }
 0x1de   :  { %1324 = vmatprep.mubr.msk.f32.mxu0 %vm1570_vm0, %v1569_v9  ;;  %v287_v46 = vsub.f32 %v1756_v45, %v1749_v21  ;;  %v294_v21 = vlaneseq }
 0x1e0   :  { %v295_v45 = vand.u32 127, %v294_v21 }
 0x2b0   :  { %v606_v50 = vpop.f32.mrb[4].mxu0 }
 0x2b1   :  { %v611_v51 = vmul.f32 %v610_v49, %v606_v50  ;;  %v1316_v52 = vpop.f32.mrb[5].mxu0  ;;  %v620_v3 = vmul.f32 %v619_v62, %v606_v50 }
 0x2b3   :  { %v613_v53 = vsel %vm612_vm5, %v611_v51, 0.0  ;;  %v621_v8 = vsel %vm612_vm5, %v620_v3, 0.0  ;;  %v432_v3 = vmul.f32 0.5, %v1803_v22 }
 0x2b4   :  { %614 = vadd.xlane.f32.xlu0 %v613_v53 }
 0x341   :  { %v615_v55 = vpop.xlane.xlu0 %614 }
 0x342   :  { %v617_v56 = vadd.f32 %v616_v54, %v615_v55 }
 0x344   :  { %1367 = vtanh.f32 %v617_v56 }
 0x34e   :  { %v1368_v58 = vpop.eup %1367 }
 0x34f   :  { %1323 = vmatpush3.msra.mxu0 %v1368_v58  ;;  %v626_v10 = vsub.f32 0.0, %v1368_v58 }
 0x350   :  { %1325 = vmatmul.mubr.msk.f32.vlgmr.msra.gmra.mrb[6].mxu0 %vm127_vm1, %v1774_v57  ;;  %1332 = vmatprep.subr.mxu0 %v1569_v9 }
 0x351   :  { %1333 = vmatpush3.msk.msra.mxu0 %vm536_vm3, %v935_v42  ;;  %1334 = vmatprep.mubr.msk.f32.mxu0 %vm1570_vm0, %v1569_v9  ;;  %v627_v11 = vmul.f32 1.442695, %v626_v10  ;;  %v433_v10 = vmul.f32 0.5, %v1808_v23 }
 0x352   :  { %1342 = vmatprep.subr.mxu0 %v1569_v9 }
 0x353   :  { %1369 = vpow2.f32 %v627_v11 }
 0x354   :  { %1335 = vmatmul.mubr.msk.f32.vlgmr.msra.gmra.mrb[8].mxu0 %vm532_vm4, %v531_v43 }
 0x355   :  { %1344 = vmatprep.mubr.msk.f32.mxu0 %vm1570_vm0, %v1569_v9 }
 0x35d   :  { %v1370_v13 = vpop.eup %1369 }
 0x423   :  { %v1786_v60 = vpop.f32.mrb[6].mxu0 }
 0x424   :  { %v1326_v61 = vpop.f32.mrb[7].mxu0 }
 0x427   :  { %v1005_v63 = vpop.f32.mrb[8].mxu0 }
 0x428   :  { %v1015_v0 = vmul.f32 %v1005_v63, %v619_v62  ;;  %v1336_v1 = vpop.f32.mrb[9].mxu0  ;;  %v1009_v2 = vmul.f32 %v1005_v63, %v610_v49 }
 0x42a   :  { %v1016_v4 = vsel %vm612_vm5, %v1015_v0, 0.0  ;;  %v1010_v5 = vsel %vm612_vm5, %v1009_v2, 0.0 }
 0x42b   :  { %1017 = vadd.xlane.f32.xlu0 %v1016_v4  ;;  %1011 = vadd.xlane.f32.xlu1 %v1010_v5 }
 0x42f   :  { %622 = vadd.xlane.f32.xlu1 %v621_v8 }
 0x440   :  { %307 = vperm.xlu1 %1363, %v304_v12  }
 0x444   :  { %638 = vperm.xlu1 %1363, %v1370_v13  }
 0x4b8   :  { %v1018_v15 = vpop.xlane.xlu0 %1017  ;;  %v1012_v16 = vpop.xlane.xlu1 %1011 }
 0x4b9   :  { %v1019_v17 = vadd.f32 %v1018_v15, %v624_v14  ;;  %v1013_v18 = vadd.f32 %v1012_v16, %v616_v54 }
 0x4bb   :  { %1371 = vtanh.f32 %v1013_v18  ;;  %1025 = vperm.xlu1 %1363, %v1019_v17   ;;  %v842_v17 = vmul.f32 0.5, %v1813_v24 }
 0x4bc   :  { %v623_v19 = vpop.xlane.xlu1 %622 }
 0x4bd   :  { %v625_v20 = vadd.f32 %v624_v14, %v623_v19  ;;  %v434_v14 = vmul.f32 %v432_v3, %v1803_v22 }
 0x4bf   :  { %631 = vperm.xlu0 %1364, %v625_v20  }
 0x4c0   :  { %v308_v26 = vpop.permute.xlu1 %307 }
 0x4c1   :  { %v380_v27 = vadd.f32 %v379_v47, %v308_v26  ;;  %v382_v28 = vadd.f32 %v381_v48, %v308_v26 }
 0x4c3   :  { %v1821_v29 = vadd.f32 %v1803_v22, %v380_v27  ;;  %v1824_v30 = vadd.f32 %v1808_v23, %v382_v28  ;;  %v1827_v31 = vadd.f32 %v1813_v24, %v380_v27  ;;  %v1830_v32 = vadd.f32 %v1818_v25, %v382_v28 }
 0x4c4   :  { %v843_v27 = vmul.f32 0.5, %v1818_v25 }
 0x4c5   :  { %v1372_v33 = vpop.eup %1371  ;;  %v388_v34 = vand.u32 2147483647, %v1821_v29  ;;  %v389_v35 = vand.u32 2147483647, %v1824_v30  ;;  %v798_v36 = vand.u32 2147483647, %v1827_v31 }
 0x4c6   :  { %v1020_v37 = vsub.f32 0.0, %v1372_v33  ;;  %v799_v38 = vand.u32 2147483647, %v1830_v32  ;;  %1343 = vmatpush3.msra.mxu0 %v1372_v33  ;;  %vm396_vm6 = vcmp.ge.f32.partialorder %v1821_v29, 0.0  ;;  %vm397_vm7 = vcmp.ge.f32.partialorder %v1824_v30, 0.0 }
 0x4c7   :  { %v390_v39 = vsub.f32 0.0, %v388_v34  ;;  %v391_v40 = vsub.f32 0.0, %v389_v35  ;;  %v800_v41 = vsub.f32 0.0, %v798_v36  ;;  %1345 = vmatmul.mubr.msk.f32.vlgmr.msra.gmra.mrb[10].mxu0 %vm127_vm1, %v1774_v57  ;;  %vm806_vm8 = vcmp.ge.f32.partialorder %v1827_v31, 0.0 }
 0x4c8   :  { %v1021_v42 = vmul.f32 1.442695, %v1020_v37  ;;  %v801_v43 = vsub.f32 0.0, %v799_v38  ;;  %vm807_vm9 = vcmp.ge.f32.partialorder %v1830_v32, 0.0  ;;  %v406_v19 = vmax.f32 %v1821_v29, 0.0 }
 0x4c9   :  { %v392_v44 = vmul.f32 1.442695, %v390_v39  ;;  %v394_v47 = vmul.f32 1.442695, %v391_v40  ;;  %v802_v48 = vmul.f32 1.442695, %v800_v41 }
 0x4ca   :  { %1373 = vpow2.f32 %v1021_v42  ;;  %v804_v49 = vmul.f32 1.442695, %v801_v43  ;;  %v407_v20 = vmax.f32 %v1824_v30, 0.0  ;;  %v816_v35 = vmax.f32 %v1827_v31, 0.0 }
 0x4cb   :  { %1375 = vpow2.f32 %v392_v44 }
 0x4cc   :  { %1377 = vpow2.f32 %v394_v47 }
 0x4cd   :  { %1379 = vpow2.f32 %v802_v48 }
 0x4ce   :  { %1381 = vpow2.f32 %v804_v49 }
 0x4d4   :  { %v1374_v50 = vpop.eup %1373 }
 0x4d5   :  { %v1376_v51 = vpop.eup %1375  ;;  %1032 = vperm.xlu1 %1363, %v1374_v50  }
 0x4d6   :  { %v1378_v52 = vpop.eup %1377  ;;  %v400_v53 = vadd.f32 1.0, %v1376_v51  ;;  %v1840_v54 = vsel %vm396_vm6, 1.0, %v1376_v51  ;;  %v411_v63 = vmul.f32 -0.5, %v1376_v51  ;;  %v414_v11 = vand.u32 2147483647, %v1376_v51 }
 0x4d7   :  { %v1380_v55 = vpop.eup %1379  ;;  %v401_v56 = vadd.f32 1.0, %v1378_v52  ;;  %v1842_v58 = vsel %vm397_vm7, 1.0, %v1378_v52  ;;  %v420_v0 = vmul.f32 -0.5, %v1378_v52  ;;  %v423_v13 = vand.u32 2147483647, %v1378_v52 }
 0x4d8   :  { %v1382_v59 = vpop.eup %1381  ;;  %1383 = vlog2.f32 %v400_v53  ;;  %v810_v61 = vadd.f32 1.0, %v1380_v55  ;;  %v808_v1 = vsel %vm806_vm8, 1.0, %v1380_v55  ;;  %v821_v4 = vmul.f32 -0.5, %v1380_v55 }
 0x4d9   :  { %1385 = vlog2.f32 %v401_v56  ;;  %v811_v62 = vadd.f32 1.0, %v1382_v59  ;;  %v809_v2 = vsel %vm807_vm9, 1.0, %v1382_v59  ;;  %v830_v5 = vmul.f32 -0.5, %v1382_v59 }
 0x4da   :  { %1387 = vlog2.f32 %v810_v61  ;;  %v412_v8 = vadd.f32 1.0, %v411_v63  ;;  %v421_v12 = vadd.f32 1.0, %v420_v0  ;;  %v822_v15 = vadd.f32 1.0, %v821_v4 }
 0x4db   :  { %1389 = vlog2.f32 %v811_v62  ;;  %v824_v16 = vand.u32 2147483647, %v1380_v55  ;;  %v831_v26 = vadd.f32 1.0, %v830_v5  ;;  %v833_v36 = vand.u32 2147483647, %v1382_v59 }
 0x4dc   :  { %1391 = vrcp.f32 %v810_v61  ;;  %v413_v34 = vmul.f32 %v1376_v51, %v412_v8  ;;  %vm415_vm10 = vcmp.lt.f32.partialorder %v414_v11, 0.0004427343  ;;  %v422_v38 = vmul.f32 %v1378_v52, %v421_v12 }
 0x4dd   :  { %1393 = vrcp.f32 %v811_v62  ;;  %vm424_vm11 = vcmp.lt.f32.partialorder %v423_v13, 0.0004427343  ;;  %v823_v42 = vmul.f32 %v1380_v55, %v822_v15  ;;  %vm825_vm12 = vcmp.lt.f32.partialorder %v824_v16, 0.0004427343 }
 0x4de   :  { %1395 = vrcp.f32 %v400_v53  ;;  %v832_v48 = vmul.f32 %v1382_v59, %v831_v26  ;;  %v817_v51 = vmax.f32 %v1830_v32, 0.0  ;;  %vm834_vm13 = vcmp.lt.f32.partialorder %v833_v36, 0.0004427343 }
 0x4df   :  { %1397 = vrcp.f32 %v401_v56  ;;  %v435_v55 = vmul.f32 %v433_v10, %v1808_v23  ;;  %v844_v12 = vmul.f32 %v1813_v24, %v842_v17 }
 0x4e2   :  { %v1384_v18 = vpop.eup %1383 }
 0x4e3   :  { %v1386_v28 = vpop.eup %1385  ;;  %v410_v33 = vmul.f32 0.6931472, %v1384_v18  ;;  %v845_v18 = vmul.f32 %v1818_v25, %v843_v27  ;;  %v639_v27 = vpop.permute.xlu1 %638 }
 0x4e4   :  { %v1388_v37 = vpop.eup %1387  ;;  %v419_v22 = vmul.f32 0.6931472, %v1386_v28 }
 0x4e5   :  { %v1390_v39 = vpop.eup %1389  ;;  %v416_v40 = vsel %vm415_vm10, %v413_v34, %v410_v33  ;;  %v820_v41 = vmul.f32 0.6931472, %v1388_v37 }
 0x4e6   :  { %v425_v43 = vsel %vm424_vm11, %v422_v38, %v419_v22  ;;  %v426_v44 = vadd.f32 %v416_v40, %v406_v19  ;;  %v829_v47 = vmul.f32 0.6931472, %v1390_v39  ;;  %v1392_v49 = vpop.eup %1391 }
 0x4e7   :  { %v427_v50 = vadd.f32 %v425_v43, %v407_v20  ;;  %v826_v53 = vsel %vm825_vm12, %v823_v42, %v820_v41  ;;  %v1394_v56 = vpop.eup %1393  ;;  %v813_v63 = vmul.f32 %v1392_v49, %v808_v1 }
 0x4e8   :  { %v428_v61 = vmul.f32 2.0, %v426_v44  ;;  %v835_v62 = vsel %vm834_vm13, %v832_v48, %v829_v47  ;;  %v836_v52 = vadd.f32 %v826_v53, %v816_v35  ;;  %v1396_v0 = vpop.eup %1395  ;;  %v815_v5 = vmul.f32 %v1394_v56, %v809_v2 }
 0x4e9   :  { %v429_v3 = vmul.f32 2.0, %v427_v50  ;;  %v837_v4 = vadd.f32 %v835_v62, %v817_v51  ;;  %v1398_v8 = vpop.eup %1397  ;;  %v403_v13 = vmul.f32 %v1396_v0, %v1840_v54  ;;  %v923_v36 = vmul.f32 0.0078125, %v813_v63 }
 0x4ea   :  { %v430_v59 = vsub.f32 %v428_v61, %v1821_v29  ;;  %v838_v11 = vmul.f32 2.0, %v836_v52  ;;  %v405_v1 = vmul.f32 %v1398_v8, %v1842_v58  ;;  %v924_v37 = vmul.f32 0.0078125, %v815_v5 }
 0x4eb   :  { %v431_v15 = vsub.f32 %v429_v3, %v1824_v30  ;;  %v839_v16 = vmul.f32 2.0, %v837_v4  ;;  %v517_v24 = vmul.f32 0.0078125, %v403_v13  ;;  %v925_v38 = vadd.f32 %v1713_v6, %v923_v36 }
 0x4ec   :  { %v436_v19 = vsub.f32 %v430_v59, %v434_v14  ;;  %v840_v23 = vsub.f32 %v838_v11, %v1827_v31  ;;  %v518_v54 = vmul.f32 0.0078125, %v405_v1  ;;  %v926_v39 = vadd.f32 %v1715_v7, %v924_v37 }
 0x4ed   :  { %v437_v10 = vsub.f32 %v431_v15, %v435_v55  ;;  %v841_v2 = vsub.f32 %v839_v16, %v1830_v32  ;;  %v519_v30 = vadd.f32 %v1713_v6, %v517_v24  ;;  %v289_v50 = vsel %vm288_vm14, %v287_v46, 0.0 }
 0x4ee   :  { %v846_v20 = vsub.f32 %v840_v23, %v844_v12  ;;  %v520_v25 = vadd.f32 %v1715_v7, %v518_v54  ;;  %v297_v46 = vshrl.u32 %v294_v21, 7  ;;  %v790_v4 = vmul.f32 256.0, %v1786_v60 }
 0x4ef   :  { %v438_v29 = vadd.f32 %v437_v10, %v436_v19  ;;  %v847_v26 = vsub.f32 %v841_v2, %v845_v18 }
 0x4f0   :  { %v1888_v56 = vsub.s32 %v295_v45, %v297_v46 }
 0x4f1   :  { %v848_v28 = vadd.f32 %v847_v26, %v846_v20 }
 0x4f9   :  { %439 = vadd.xlane.f32.xlu1 %v438_v29 }
 0x4fd   :  { %849 = vadd.xlane.f32.xlu1 %v848_v28 }
 0x53a   :  { %v1026_v22 = vpop.permute.xlu1 %1025 }
 0x53b   :  { %v1028_v40 = vsub.f32 %v925_v38, %v1026_v22  ;;  %v1029_v41 = vsub.f32 %v926_v39, %v1026_v22 }
 0x53e   :  { %v632_v17 = vpop.permute.xlu0 %631 }
 0x53f   :  { %v634_v58 = vsub.f32 %v519_v30, %v632_v17  ;;  %v635_v14 = vsub.f32 %v520_v25, %v632_v17 }
 0x541   :  { %v641_v31 = vmul.f32 %v639_v27, %v634_v58  ;;  %v642_v33 = vmul.f32 %v639_v27, %v635_v14 }
 0x543   :  { %v643_v34 = vmul.f32 %v641_v31, %v641_v31  ;;  %v644_v32 = vmul.f32 %v642_v33, %v642_v33 }
 0x545   :  { %v645_v35 = vadd.f32 %v644_v32, %v643_v34 }
 0x547   :  { %646 = vadd.xlane.f32.xlu0 %v645_v35 }
 0x554   :  { %v1033_v42 = vpop.permute.xlu1 %1032 }
 0x555   :  { %v1035_v43 = vmul.f32 %v1033_v42, %v1028_v40  ;;  %v1036_v44 = vmul.f32 %v1033_v42, %v1029_v41 }
 0x557   :  { %v1037_v47 = vmul.f32 %v1035_v43, %v1035_v43  ;;  %v1038_v48 = vmul.f32 %v1036_v44, %v1036_v44 }
 0x559   :  { %v1039_v49 = vadd.f32 %v1038_v48, %v1037_v47 }
 0x55b   :  { %1040 = vadd.xlane.f32.xlu1 %v1039_v49 }
 0x55f   :  { %290 = vadd.xlane.f32.xlu1 %v289_v50 }
 0x586   :  { %v440_v51 = vpop.xlane.xlu1 %439 }
 0x587   :  { %1308 = vmatpush3.msra.mxu1 %v440_v51 }
 0x588   :  { %1310 = vmatmul.mubr.msk.f32.vlgmr.msra.gmra.mrb[2].mxu1 %vm127_vm1, %v1774_v57  ;;  %1317 = vmatprep.subr.mxu1 %v1569_v9 }
 0x589   :  { %1319 = vmatprep.mubr.msk.f32.mxu1 %vm1570_vm0, %v1569_v9 }
 0x58a   :  { %v850_v7 = vpop.xlane.xlu1 %849 }
 0x59a   :  { %v1178_v63 = vpop.f32.mrb[10].mxu0 }
 0x59b   :  { %v1346_v0 = vpop.f32.mrb[11].mxu0  ;;  %v1184_v16 = vmul.f32 256.0, %v1178_v63 }
 0x5d4   :  { %v647_v6 = vpop.xlane.xlu0 %646 }
 0x5d5   :  { %1318 = vmatpush3.msra.mxu1 %v647_v6 }
 0x5d6   :  { %1320 = vmatmul.mubr.msk.f32.vlgmr.msra.gmra.mrb[4].mxu1 %vm127_vm1, %v1774_v57  ;;  %1327 = vmatprep.subr.mxu1 %v1569_v9 }
 0x5d7   :  { %1328 = vmatpush3.msra.mxu1 %v850_v7  ;;  %1329 = vmatprep.mubr.msk.f32.mxu1 %vm1570_vm0, %v1569_v9 }
 0x5d8   :  { %1337 = vmatprep.subr.mxu1 %v1569_v9 }
 0x5da   :  { %1330 = vmatmul.mubr.msk.f32.vlgmr.msra.gmra.mrb[2].mxu1 %vm127_vm1, %v1774_v57 }
 0x5db   :  { %1339 = vmatprep.mubr.msk.f32.mxu1 %vm1570_vm0, %v1569_v9 }
 0x5e8   :  { %v1041_v53 = vpop.xlane.xlu1 %1040 }
 0x5e9   :  { %1338 = vmatpush3.msra.mxu1 %v1041_v53 }
 0x5ea   :  { %1340 = vmatmul.mubr.msk.f32.vlgmr.msra.gmra.mrb[6].mxu1 %vm127_vm1, %v1774_v57 }
 0x5ec   :  { %v291_v61 = vpop.xlane.xlu1 %290 }
 0x5ed   :  { %v292_v62 = vmul.f32 0.5, %v291_v61 }
 0x5ef   :  { %v299_v52 = vrot.slane %v292_v62, %v1888_v56 }
 0x5f1   :  { %302 = vst.msk [vmem:[#allocation11] sm:$0x1] %vm301_vm15, %v299_v52 }
 0x6a9   :  { %v714_v9 = vpop.f32.mrb[4].mxu1 }
 0x6aa   :  { %v788_v3 = vmul.f32 -0.5, %v714_v9  ;;  %v1321_v55 = vpop.f32.mrb[5].mxu1 }
 0x6ac   :  { %v1267_v5 = vadd.f32 -940.99304, %v788_v3 }
 0x6ad   :  { %v917_v8 = vpop.f32.mrb[2].mxu1 }
 0x6ae   :  { %v791_v59 = vsub.f32 %v1267_v5, %v790_v4  ;;  %v1348_v57 = vadd.f32 -1881.9861, %v917_v8  ;;  %v1331_v11 = vpop.f32.mrb[3].mxu1 }
 0x6b0   :  { %v1187_v12 = vmul.f32 0.5, %v1348_v57 }
 0x6b2   :  { %1190 = vperm.xlu1 %1363, %v1187_v12  }
 0x6bd   :  { %v1108_v13 = vpop.f32.mrb[6].mxu1 }
 0x6be   :  { %v1182_v15 = vmul.f32 -0.5, %v1108_v13  ;;  %v1341_v18 = vpop.f32.mrb[7].mxu1 }
 0x6c0   :  { %v1276_v1 = vadd.f32 -940.99304, %v1182_v15 }
 0x6c2   :  { %v1185_v19 = vsub.f32 %v1276_v1, %v1184_v16 }
 0x6c4   :  { %v1186_v23 = vadd.f32 %v1185_v19, %v791_v59 }
 0x6c6   :  { %v1198_v10 = vmul.f32 -0.5, %v1186_v23 }
 0x6c8   :  { %1201 = vperm.xlu0 %1364, %v1198_v10  }
 0x6c9   :  { %1498 = shalt.err (!%p1495_p8)
}
 0x6ca   :  { %s1499_s6 = scalar_lea.hbm %s1949_s16, 16 }
 0x6cb   :  { %p1500_p9 = scmp.ne.s32.totalorder %s1949_s16, %s1499_s6  ;;  %p1503_p10 = scmp.lt.u32.totalorder %s1499_s6, %s1949_s16 }
 0x6cd   :  { %p1505_p11 = pnand %p1503_p10, %p1500_p9 }
 0x6cf   :  { %1508 = shalt.err (!%p1505_p11)
}
 0x6d0   :  { %1228 = dma.vmem_to_hbm [thread:$0]  %s1226_s26, 16, %s1949_s16, [#allocation12]  }
 0x6d1   :  { %s1573_s2 = smov [#allocation13]  }
 0x6d2   :  { %s1235_s25 = sshll.u32 %s1573_s2, 4  ;;  %s1236_s25 = int_to_ptr.vmem [resolvable:$true] %s1235_s25 }
 0x6d3   :  { %s1509_s9 = scalar_lea.vmem %s1236_s25, 16  ;;  %s1513_s11 = scalar_lea.vmem %s1236_s25, 32 }
 0x6d4   :  { %p1510_p12 = scmp.ne.s32.totalorder %s1236_s25, %s1509_s9  ;;  %p1514_p13 = scmp.lt.s32.totalorder %s1236_s25, %s1236_s25 }
 0x6d5   :  { %p1515_p0 = scmp.lt.s32.totalorder %s1513_s11, %s1509_s9 }
 0x6d7   :  { %p1516_p1 = por %p1515_p0, %p1514_p13 }
 0x6d9   :  { %p1517_p2 = pnand %p1516_p1, %p1510_p12 }
 0x731   :  { %v1191_v60 = vpop.permute.xlu1 %1190 }
 0x732   :  { %v1195_v2 = vrot.slane %v1191_v60, %v1888_v56 }
 0x734   :  { %1197 = vst.msk [vmem:[#allocation13] sm:$0x1] %vm301_vm15, %v1195_v2 }
 0x735   :  { %1520 = shalt.err (!%p1517_p2)
}
 0x736   :  { %s1961_s10 = sld [smem:[#allocation22_spill]] }
 0x73c   :  { %s1521_s16 = scalar_lea.hbm %s1961_s10, 16 }
 0x73d   :  { %p1522_p3 = scmp.ne.s32.totalorder %s1961_s10, %s1521_s16  ;;  %p1525_p4 = scmp.lt.u32.totalorder %s1521_s16, %s1961_s10 }
 0x73f   :  { %p1527_p5 = pnand %p1525_p4, %p1522_p3 }
 0x741   :  { %1530 = shalt.err (!%p1527_p5)
}
 0x742   :  { %1238 = dma.vmem_to_hbm [thread:$0]  %s1236_s25, 16, %s1961_s10, [#allocation12]  }
 0x743   :  { %s1574_s12 = smov [#allocation10]  }
 0x744   :  { %s1215_s27 = sshll.u32 %s1574_s12, 4  ;;  %s1216_s27 = int_to_ptr.vmem [resolvable:$true] %s1215_s27 }
 0x745   :  { %s1531_s17 = scalar_lea.vmem %s1216_s27, 16  ;;  %s1535_s8 = scalar_lea.vmem %s1216_s27, 32 }
 0x746   :  { %p1532_p6 = scmp.ne.s32.totalorder %s1216_s27, %s1531_s17  ;;  %p1536_p7 = scmp.lt.s32.totalorder %s1216_s27, %s1216_s27 }
 0x747   :  { %v1202_v20 = vpop.permute.xlu0 %1201  ;;  %p1537_p8 = scmp.lt.s32.totalorder %s1535_s8, %s1531_s17 }
 0x748   :  { %v1206_v29 = vrot.slane %v1202_v20, %v1888_v56 }
 0x749   :  { %p1538_p9 = por %p1537_p8, %p1536_p7 }
 0x74a   :  { %1208 = vst.msk [vmem:[#allocation10] sm:$0x1] %vm301_vm15, %v1206_v29 }
 0x74b   :  { %p1539_p10 = pnand %p1538_p9, %p1532_p6 }
 0x74d   :  { %1542 = shalt.err (!%p1539_p10)
}
 0x74e   :  { %s1962_s28 = sld [smem:[#allocation21_spill]] }
 0x754   :  { %s1543_s29 = scalar_lea.hbm %s1962_s28, 16 }
 0x755   :  { %p1544_p11 = scmp.ne.s32.totalorder %s1962_s28, %s1543_s29  ;;  %p1547_p12 = scmp.lt.u32.totalorder %s1543_s29, %s1962_s28 }
 0x757   :  { %p1549_p13 = pnand %p1547_p12, %p1544_p11 }
 0x759   :  { %1552 = shalt.err (!%p1549_p13)
}
 0x75a   :  { %1218 = dma.vmem_to_hbm [thread:$0]  %s1216_s27, 16, %s1962_s28, [#allocation4]  }
 0x75b   :  { %1559 = dma.done.wait [#allocation4], 16  }
 0x75c   :  { %1560 = vsyncadd [#allocation4], 4294967280 }
 0x75d   :  { %1561 = dma.done.wait [#allocation12], 32  }
 0x75e   :  { %1562 = vsyncadd [#allocation12], 4294967264 }
 0x75f   :  { %1248 = vsyncpa [#allocation3], 1 }
 0x760   :  { %1249 = vsyncpa [#allocation6], 1 }
 0x761   :  { %1250 = vsyncpa [#allocation9], 1 }
 0x762   :  { %1251 = vsyncpa [#allocation4], 1 }
 0x763   :  { %1252 = vsyncpa [#allocation12], 1 }

</bundles_post_ra>
